<compile_context>
chip_gen: v6e
topology: v6e:2x2x1
jax: 0.10.0
libtpu: 0.0.40
codegen_flags: <defaults>
</compile_context>

<pallas_src>
import functools

import jax
import jax.numpy as jnp
from jax import lax
from jax.experimental import pallas as pl
from jax.experimental.pallas import tpu as pltpu

EPS = 1e-5


def _bn_scale_shift(h, g_col, b_col, inv_r):
    """Training-mode BN stats (biased var) -> per-channel scale/shift columns (C, 1)."""
    # TODO(synk): E[x^2]-E[x]^2 can catastrophically cancel for large |mean|/std or huge R;
    # switch to a centered second pass / Welford partial sums when this kernel is gridded.
    s = jnp.sum(h, axis=1, keepdims=True)             # (C, 1)
    ss = jnp.sum(h * h, axis=1, keepdims=True)        # (C, 1)
    mean = s * inv_r
    var = ss * inv_r - mean * mean
    scale = g_col * lax.rsqrt(var + EPS)
    shift = b_col - mean * scale
    return scale, shift


def _diag(col):
    """(C, 1) column -> (C, C) diagonal matrix (avoids a small in-kernel transpose)."""
    c = col.shape[0]
    ii = lax.broadcasted_iota(jnp.int32, (c, c), 0)
    jj = lax.broadcasted_iota(jnp.int32, (c, c), 1)
    return jnp.where(ii == jj, col, 0.0)


def _lane_coords(r, img_h, img_w):
    """(1, R) h/w coordinates of each flattened pixel along the lane axis."""
    lane = lax.broadcasted_iota(jnp.int32, (1, r), 1)
    if img_w & (img_w - 1) == 0:                      # power-of-two fast path (bit ops only)
        wpos = lane & (img_w - 1)
        row = lane >> (img_w.bit_length() - 1)
    else:
        wpos = lane % img_w
        row = lane // img_w
    if img_h & (img_h - 1) == 0:
        hpos = row & (img_h - 1)
    else:
        hpos = row % img_h
    return hpos, wpos


def prebottleneck_kernel(x_ref, g1_ref, b1_ref, w1_ref, g2_ref, b2_ref, w2_ref,
                         g3_ref, b3_ref, w3_ref, o_ref, *, img_h, img_w):
    cin, r = x_ref.shape                   # (Cin, N*H*W) — pixels on lanes (dense)
    wid = w1_ref.shape[0]                  # bottleneck width
    inv_r = 1.0 / r
    bf16 = jnp.bfloat16

    # ---- bn1 (fused stats) folded into conv1 (1x1) -> relu ----
    x = x_ref[...]                                                     # (Cin, R) f32
    sc1, sh1 = _bn_scale_shift(x, g1_ref[...], b1_ref[...], inv_r)     # (Cin, 1)
    w1s = jnp.dot(w1_ref[...], _diag(sc1), preferred_element_type=jnp.float32)   # (wid, Cin)
    bias1 = jnp.dot(w1_ref[...], sh1, preferred_element_type=jnp.float32)        # (wid, 1)
    h1 = jnp.maximum(
        jnp.dot(w1s.astype(bf16), x.astype(bf16),
                preferred_element_type=jnp.float32) + bias1, 0.0)      # (wid, R)

    # ---- bn2 apply (FMA; shift can't fold into a zero-padded conv) ----
    sc2, sh2 = _bn_scale_shift(h1, g2_ref[...], b2_ref[...], inv_r)
    h2 = h1 * sc2 + sh2                                                # (wid, R)

    # ---- conv2 (3x3, stride 1, zero pad 1): 9 rolled+masked taps -> 1 im2col matmul ----
    hpos, wpos = _lane_coords(r, img_h, img_w)
    ones_row = jnp.ones((1, r), jnp.float32)
    w_ok = {-1: jnp.where(wpos >= 1, 1.0, 0.0), 0: ones_row,
            1: jnp.where(wpos <= img_w - 2, 1.0, 0.0)}
    h_ok = {-1: jnp.where(hpos >= 1, 1.0, 0.0), 0: ones_row,
            1: jnp.where(hpos <= img_h - 2, 1.0, 0.0)}

    taps = []
    for dy in (-1, 0, 1):
        for dx in (-1, 0, 1):
            if dy == 0 and dx == 0:
                taps.append(h2)                                        # centre: no roll/mask
            else:
                s = dy * img_w + dx
                tap = pltpu.roll(h2, shift=(-s) % r, axis=1)           # XLU lane rotate
                # (1, R) boundary mask zeroes out-of-image taps AND every wrap-around lane.
                taps.append(tap * (h_ok[dy] * w_ok[dx]))
    im2col = jnp.concatenate(taps, axis=0)                             # (9*wid, R)
    h2c = jnp.maximum(
        jnp.dot(w2_ref[...], im2col.astype(bf16),
                preferred_element_type=jnp.float32), 0.0)              # (wid, R)

    # ---- bn3 folded into conv3 (1x1) -> relu ----
    sc3, sh3 = _bn_scale_shift(h2c, g3_ref[...], b3_ref[...], inv_r)
    w3s = jnp.dot(w3_ref[...], _diag(sc3), preferred_element_type=jnp.float32)   # (Cout, wid)
    bias3 = jnp.dot(w3_ref[...], sh3, preferred_element_type=jnp.float32)        # (Cout, 1)
    h3 = jnp.maximum(
        jnp.dot(w3s.astype(bf16), h2c.astype(bf16),
                preferred_element_type=jnp.float32) + bias3, 0.0)      # (Cout, R)

    # ---- residual add: re-read x here (keeps x's live range short) ----
    o_ref[...] = h3 + x_ref[...]                                       # dense, unmasked stores


def prebottleneck_pallas(x_cr, g1, b1, w1, g2, b2, w2_im2col, g3, b3, w3, *, img_h, img_w):
    cin, r = x_cr.shape
    cout = w3.shape[0]
    kernel = functools.partial(prebottleneck_kernel, img_h=img_h, img_w=img_w)
    vmem = pl.BlockSpec(memory_space=pltpu.MemorySpace.VMEM)
    # TODO(synk): at real ResNet sizes this must become a gridded two-pass design
    # ("parallel" R-tiles for the conv/apply work, BN batch stats via a partial-sum pass or
    # an "arbitrary" reduction axis) so it fits v7x's 64 MiB VMEM and uses both TensorCores;
    # gridless single-call is the right choice at this toy shape.
    return pl.pallas_call(
        kernel,
        out_shape=jax.ShapeDtypeStruct((cout, r), jnp.float32),
        in_specs=[vmem] * 10,
        out_specs=vmem,
        compiler_params=pltpu.CompilerParams(vmem_limit_bytes=32 * 1024 * 1024),
    )(x_cr, g1, b1, w1, g2, b2, w2_im2col, g3, b3, w3)


def prebottleneck_forward(x_nchw, params):
    """Wrapper: NCHW in/out (PyTorch convention), (C, N*H*W) lane-dense inside the kernel."""
    g1, b1, w1_oi, g2, b2, w2_oihw, g3, b3, w3_oi = params
    n, cin, img_h, img_w = x_nchw.shape
    wid = w1_oi.shape[0]
    cout = w3_oi.shape[0]
    r = n * img_h * img_w
    # TODO(synk): at real sizes keep activations lane-dense across layers (or fold this
    # layout change into a gridded BlockSpec index_map) instead of paying a full HBM
    # transpose on entry and exit.
    x_cr = jnp.transpose(x_nchw, (1, 0, 2, 3)).reshape(cin, r)
    # conv2 weight (O, I, 3, 3) -> im2col layout (O, 9*I), tap-major (ky, kx), bf16.
    w2_im2col = jnp.transpose(w2_oihw, (0, 2, 3, 1)).reshape(wid, 9 * wid).astype(jnp.bfloat16)
    col = lambda v: v.reshape(-1, 1).astype(jnp.float32)
    out_cr = prebottleneck_pallas(
        x_cr, col(g1), col(b1), w1_oi, col(g2), col(b2), w2_im2col,
        col(g3), col(b3), w3_oi, img_h=img_h, img_w=img_w)
    return jnp.transpose(out_cr.reshape(cout, n, img_h, img_w), (1, 0, 2, 3))


def prebottleneck_reference(x, g1, b1, w1_oi, g2, b2, w2_oihw, g3, b3, w3_oi):
    """Pure-JAX f32 NCHW reference (training-mode BN) for correctness checking."""
    def bn(h, g, b):
        m = jnp.mean(h, axis=(0, 2, 3), keepdims=True)
        v = jnp.mean((h - m) ** 2, axis=(0, 2, 3), keepdims=True)
        return (h - m) * lax.rsqrt(v + EPS) * g.reshape(1, -1, 1, 1) + b.reshape(1, -1, 1, 1)

    def conv1x1(h, w_oi):
        return jnp.einsum("nchw,dc->ndhw", h, w_oi)

    h = jnp.maximum(conv1x1(bn(x, g1, b1), w1_oi), 0.0)
    h = bn(h, g2, b2)
    h = lax.conv_general_dilated(h, w2_oihw, (1, 1), "SAME",
                                 dimension_numbers=("NCHW", "OIHW", "NCHW"))
    h = jnp.maximum(h, 0.0)
    h = jnp.maximum(conv1x1(bn(h, g3, b3), w3_oi), 0.0)
    return h + x


if __name__ == "__main__":
    # Module hyper-params (small, residual-compatible):
    #   planes=4, expansion=4 -> inplanes = 16, width = planes * (64/64) * 1 = 4
    planes = 4
    inplanes = planes * 4
    width = planes
    cout = planes * 4
    N, H, W = 2, 16, 16

    key = jax.random.PRNGKey(0)
    ks = jax.random.split(key, 10)

    x_nchw = jax.random.normal(ks[0], (N, inplanes, H, W), jnp.float32)

    # PyTorch-layout synthetic parameters (BN gamma/beta; bias-free conv weights).
    g1 = 1.0 + 0.1 * jax.random.normal(ks[1], (inplanes,), jnp.float32)
    b1 = 0.1 * jax.random.normal(ks[2], (inplanes,), jnp.float32)
    w1 = 0.1 * jax.random.normal(ks[3], (width, inplanes), jnp.float32)       # conv1 (O, I)
    g2 = 1.0 + 0.1 * jax.random.normal(ks[4], (width,), jnp.float32)
    b2 = 0.1 * jax.random.normal(ks[5], (width,), jnp.float32)
    w2 = 0.1 * jax.random.normal(ks[6], (width, width, 3, 3), jnp.float32)    # conv2 (O, I, kh, kw)
    g3 = 1.0 + 0.1 * jax.random.normal(ks[7], (width,), jnp.float32)
    b3 = 0.1 * jax.random.normal(ks[8], (width,), jnp.float32)
    w3 = 0.1 * jax.random.normal(ks[9], (cout, width), jnp.float32)           # conv3 (O, I)

    params = (g1, b1, w1, g2, b2, w2, g3, b3, w3)

    out_nchw = jax.block_until_ready(prebottleneck_forward(x_nchw, params))

    ref_nchw = prebottleneck_reference(x_nchw, *params)
    # Tolerance: bf16 MXU operands plus two BN renormalizations amplify rounding relative
    # to the pure-f32 reference (expected ~1e-2 max abs); genuine bugs show up as O(0.1-1).
    max_err = float(jnp.max(jnp.abs(out_nchw - ref_nchw)))
    assert max_err < 5e-2, f"mismatch vs reference, max abs err = {max_err}"

    print("KERNEL_OK")
</pallas_src>

<mosaic_0001>
module attributes {stable_mosaic.version = 11 : i64} {
  func.func @prebottleneck_kernel(%arg0: memref<16x512xf32, #tpu.memory_space<vmem>>, %arg1: memref<16x1xf32, #tpu.memory_space<vmem>>, %arg2: memref<16x1xf32, #tpu.memory_space<vmem>>, %arg3: memref<4x16xf32, #tpu.memory_space<vmem>>, %arg4: memref<4x1xf32, #tpu.memory_space<vmem>>, %arg5: memref<4x1xf32, #tpu.memory_space<vmem>>, %arg6: memref<4x36xbf16, #tpu.memory_space<vmem>>, %arg7: memref<4x1xf32, #tpu.memory_space<vmem>>, %arg8: memref<4x1xf32, #tpu.memory_space<vmem>>, %arg9: memref<16x4xf32, #tpu.memory_space<vmem>>, %arg10: memref<16x512xf32, #tpu.memory_space<vmem>>) attributes {dimension_semantics = [], scalar_prefetch = 0 : i64, scratch_operands = 0 : i64, tpu.core_type = #tpu.core_type<tc>} {
    %c0 = arith.constant 0 : index
    %c0_0 = arith.constant 0 : index
    %0 = vector.load %arg0[%c0, %c0_0] : memref<16x512xf32, #tpu.memory_space<vmem>>, vector<16x512xf32>
    %c0_1 = arith.constant 0 : index
    %c0_2 = arith.constant 0 : index
    %1 = vector.load %arg1[%c0_1, %c0_2] : memref<16x1xf32, #tpu.memory_space<vmem>>, vector<16x1xf32>
    %c0_3 = arith.constant 0 : index
    %c0_4 = arith.constant 0 : index
    %2 = vector.load %arg2[%c0_3, %c0_4] : memref<16x1xf32, #tpu.memory_space<vmem>>, vector<16x1xf32>
    %cst = arith.constant dense<0.000000e+00> : vector<16xf32>
    %3 = vector.multi_reduction <add>, %0, %cst [1] : vector<16x512xf32> to vector<16xf32>
    %4 = vector.shape_cast %3 : vector<16xf32> to vector<16x1xf32>
    %5 = arith.mulf %0, %0 : vector<16x512xf32>
    %cst_5 = arith.constant dense<0.000000e+00> : vector<16xf32>
    %6 = vector.multi_reduction <add>, %5, %cst_5 [1] : vector<16x512xf32> to vector<16xf32>
    %7 = vector.shape_cast %6 : vector<16xf32> to vector<16x1xf32>
    %cst_6 = arith.constant 0.001953125 : f32
    %8 = vector.broadcast %cst_6 : f32 to vector<16x1xf32>
    %9 = arith.mulf %4, %8 : vector<16x1xf32>
    %cst_7 = arith.constant 0.001953125 : f32
    %10 = vector.broadcast %cst_7 : f32 to vector<16x1xf32>
    %11 = arith.mulf %7, %10 : vector<16x1xf32>
    %12 = arith.mulf %9, %9 : vector<16x1xf32>
    %13 = arith.subf %11, %12 : vector<16x1xf32>
    %cst_8 = arith.constant 9.99999974E-6 : f32
    %14 = vector.broadcast %cst_8 : f32 to vector<16x1xf32>
    %15 = arith.addf %13, %14 : vector<16x1xf32>
    %16 = math.rsqrt %15 : vector<16x1xf32>
    %17 = arith.mulf %1, %16 : vector<16x1xf32>
    %18 = arith.mulf %9, %17 : vector<16x1xf32>
    %19 = arith.subf %2, %18 : vector<16x1xf32>
    %c0_9 = arith.constant 0 : index
    %c0_10 = arith.constant 0 : index
    %20 = vector.load %arg3[%c0_9, %c0_10] : memref<4x16xf32, #tpu.memory_space<vmem>>, vector<4x16xf32>
    %21 = tpu.iota {dimensions = array<i32: 0>} : vector<16x16xi32>
    %22 = tpu.iota {dimensions = array<i32: 1>} : vector<16x16xi32>
    %23 = arith.cmpi eq, %21, %22 : vector<16x16xi32>
    %cst_11 = arith.constant 0.000000e+00 : f32
    %24 = vector.shape_cast %17 : vector<16x1xf32> to vector<16x1xf32>
    %25 = vector.broadcast %24 : vector<16x1xf32> to vector<16x16xf32>
    %26 = vector.broadcast %cst_11 : f32 to vector<16x16xf32>
    %27 = arith.select %23, %25, %26 : vector<16x16xi1>, vector<16x16xf32>
    %cst_12 = arith.constant dense<0.000000e+00> : vector<4x16xf32>
    %28 = tpu.matmul %20, %27, %cst_12 {dimension_numbers = #tpu.dot_dimension_numbers<[1], [0], [0], [1], [0, 0, 1, 1], [], []>} : vector<4x16xf32>, vector<16x16xf32>, vector<4x16xf32> -> vector<4x16xf32>
    %c0_13 = arith.constant 0 : index
    %c0_14 = arith.constant 0 : index
    %29 = vector.load %arg3[%c0_13, %c0_14] : memref<4x16xf32, #tpu.memory_space<vmem>>, vector<4x16xf32>
    %cst_15 = arith.constant dense<0.000000e+00> : vector<4x1xf32>
    %30 = tpu.matmul %29, %19, %cst_15 {dimension_numbers = #tpu.dot_dimension_numbers<[1], [0], [0], [1], [0, 0, 1, 1], [], []>} : vector<4x16xf32>, vector<16x1xf32>, vector<4x1xf32> -> vector<4x1xf32>
    %31 = arith.truncf %28 : vector<4x16xf32> to vector<4x16xbf16>
    %32 = arith.truncf %0 : vector<16x512xf32> to vector<16x512xbf16>
    %cst_16 = arith.constant dense<0.000000e+00> : vector<4x512xf32>
    %33 = tpu.matmul %31, %32, %cst_16 {dimension_numbers = #tpu.dot_dimension_numbers<[1], [0], [0], [1], [0, 0, 1, 1], [], []>} : vector<4x16xbf16>, vector<16x512xbf16>, vector<4x512xf32> -> vector<4x512xf32>
    %34 = vector.broadcast %30 : vector<4x1xf32> to vector<4x512xf32>
    %35 = arith.addf %33, %34 : vector<4x512xf32>
    %cst_17 = arith.constant 0.000000e+00 : f32
    %36 = vector.broadcast %cst_17 : f32 to vector<4x512xf32>
    %37 = arith.maximumf %35, %36 : vector<4x512xf32>
    %c0_18 = arith.constant 0 : index
    %c0_19 = arith.constant 0 : index
    %38 = vector.load %arg4[%c0_18, %c0_19] : memref<4x1xf32, #tpu.memory_space<vmem>>, vector<4x1xf32>
    %c0_20 = arith.constant 0 : index
    %c0_21 = arith.constant 0 : index
    %39 = vector.load %arg5[%c0_20, %c0_21] : memref<4x1xf32, #tpu.memory_space<vmem>>, vector<4x1xf32>
    %cst_22 = arith.constant dense<0.000000e+00> : vector<4xf32>
    %40 = vector.multi_reduction <add>, %37, %cst_22 [1] : vector<4x512xf32> to vector<4xf32>
    %41 = vector.shape_cast %40 : vector<4xf32> to vector<4x1xf32>
    %42 = arith.mulf %37, %37 : vector<4x512xf32>
    %cst_23 = arith.constant dense<0.000000e+00> : vector<4xf32>
    %43 = vector.multi_reduction <add>, %42, %cst_23 [1] : vector<4x512xf32> to vector<4xf32>
    %44 = vector.shape_cast %43 : vector<4xf32> to vector<4x1xf32>
    %cst_24 = arith.constant 0.001953125 : f32
    %45 = vector.broadcast %cst_24 : f32 to vector<4x1xf32>
    %46 = arith.mulf %41, %45 : vector<4x1xf32>
    %cst_25 = arith.constant 0.001953125 : f32
    %47 = vector.broadcast %cst_25 : f32 to vector<4x1xf32>
    %48 = arith.mulf %44, %47 : vector<4x1xf32>
    %49 = arith.mulf %46, %46 : vector<4x1xf32>
    %50 = arith.subf %48, %49 : vector<4x1xf32>
    %cst_26 = arith.constant 9.99999974E-6 : f32
    %51 = vector.broadcast %cst_26 : f32 to vector<4x1xf32>
    %52 = arith.addf %50, %51 : vector<4x1xf32>
    %53 = math.rsqrt %52 : vector<4x1xf32>
    %54 = arith.mulf %38, %53 : vector<4x1xf32>
    %55 = arith.mulf %46, %54 : vector<4x1xf32>
    %56 = arith.subf %39, %55 : vector<4x1xf32>
    %57 = vector.broadcast %54 : vector<4x1xf32> to vector<4x512xf32>
    %58 = arith.mulf %37, %57 : vector<4x512xf32>
    %59 = vector.broadcast %56 : vector<4x1xf32> to vector<4x512xf32>
    %60 = arith.addf %58, %59 : vector<4x512xf32>
    %61 = tpu.iota {dimensions = array<i32: 1>} : vector<1x512xi32>
    %c15_i32 = arith.constant 15 : i32
    %62 = vector.broadcast %c15_i32 : i32 to vector<1x512xi32>
    %63 = arith.andi %61, %62 : vector<1x512xi32>
    %c4_i32 = arith.constant 4 : i32
    %64 = vector.broadcast %c4_i32 : i32 to vector<1x512xi32>
    %65 = arith.shrsi %61, %64 : vector<1x512xi32>
    %c15_i32_27 = arith.constant 15 : i32
    %66 = vector.broadcast %c15_i32_27 : i32 to vector<1x512xi32>
    %67 = arith.andi %65, %66 : vector<1x512xi32>
    %cst_28 = arith.constant 1.000000e+00 : f32
    %68 = vector.broadcast %cst_28 : f32 to vector<1x512xf32>
    %c1_i32 = arith.constant 1 : i32
    %69 = vector.broadcast %c1_i32 : i32 to vector<1x512xi32>
    %70 = arith.cmpi sge, %63, %69 : vector<1x512xi32>
    %cst_29 = arith.constant 1.000000e+00 : f32
    %cst_30 = arith.constant 0.000000e+00 : f32
    %71 = vector.broadcast %cst_29 : f32 to vector<1x512xf32>
    %72 = vector.broadcast %cst_30 : f32 to vector<1x512xf32>
    %73 = arith.select %70, %71, %72 : vector<1x512xi1>, vector<1x512xf32>
    %c14_i32 = arith.constant 14 : i32
    %74 = vector.broadcast %c14_i32 : i32 to vector<1x512xi32>
    %75 = arith.cmpi sle, %63, %74 : vector<1x512xi32>
    %cst_31 = arith.constant 1.000000e+00 : f32
    %cst_32 = arith.constant 0.000000e+00 : f32
    %76 = vector.broadcast %cst_31 : f32 to vector<1x512xf32>
    %77 = vector.broadcast %cst_32 : f32 to vector<1x512xf32>
    %78 = arith.select %75, %76, %77 : vector<1x512xi1>, vector<1x512xf32>
    %c1_i32_33 = arith.constant 1 : i32
    %79 = vector.broadcast %c1_i32_33 : i32 to vector<1x512xi32>
    %80 = arith.cmpi sge, %67, %79 : vector<1x512xi32>
    %cst_34 = arith.constant 1.000000e+00 : f32
    %cst_35 = arith.constant 0.000000e+00 : f32
    %81 = vector.broadcast %cst_34 : f32 to vector<1x512xf32>
    %82 = vector.broadcast %cst_35 : f32 to vector<1x512xf32>
    %83 = arith.select %80, %81, %82 : vector<1x512xi1>, vector<1x512xf32>
    %c14_i32_36 = arith.constant 14 : i32
    %84 = vector.broadcast %c14_i32_36 : i32 to vector<1x512xi32>
    %85 = arith.cmpi sle, %67, %84 : vector<1x512xi32>
    %cst_37 = arith.constant 1.000000e+00 : f32
    %cst_38 = arith.constant 0.000000e+00 : f32
    %86 = vector.broadcast %cst_37 : f32 to vector<1x512xf32>
    %87 = vector.broadcast %cst_38 : f32 to vector<1x512xf32>
    %88 = arith.select %85, %86, %87 : vector<1x512xi1>, vector<1x512xf32>
    %c17_i32 = arith.constant 17 : i32
    %89 = tpu.dynamic_rotate %60 by %c17_i32 dim 1 : vector<4x512xf32>, i32 -> vector<4x512xf32>
    %90 = arith.mulf %83, %73 : vector<1x512xf32>
    %91 = vector.broadcast %90 : vector<1x512xf32> to vector<4x512xf32>
    %92 = arith.mulf %89, %91 : vector<4x512xf32>
    %c16_i32 = arith.constant 16 : i32
    %93 = tpu.dynamic_rotate %60 by %c16_i32 dim 1 : vector<4x512xf32>, i32 -> vector<4x512xf32>
    %94 = arith.mulf %83, %68 : vector<1x512xf32>
    %95 = vector.broadcast %94 : vector<1x512xf32> to vector<4x512xf32>
    %96 = arith.mulf %93, %95 : vector<4x512xf32>
    %c15_i32_39 = arith.constant 15 : i32
    %97 = tpu.dynamic_rotate %60 by %c15_i32_39 dim 1 : vector<4x512xf32>, i32 -> vector<4x512xf32>
    %98 = arith.mulf %83, %78 : vector<1x512xf32>
    %99 = vector.broadcast %98 : vector<1x512xf32> to vector<4x512xf32>
    %100 = arith.mulf %97, %99 : vector<4x512xf32>
    %c1_i32_40 = arith.constant 1 : i32
    %101 = tpu.dynamic_rotate %60 by %c1_i32_40 dim 1 : vector<4x512xf32>, i32 -> vector<4x512xf32>
    %102 = arith.mulf %68, %73 : vector<1x512xf32>
    %103 = vector.broadcast %102 : vector<1x512xf32> to vector<4x512xf32>
    %104 = arith.mulf %101, %103 : vector<4x512xf32>
    %c511_i32 = arith.constant 511 : i32
    %105 = tpu.dynamic_rotate %60 by %c511_i32 dim 1 : vector<4x512xf32>, i32 -> vector<4x512xf32>
    %106 = arith.mulf %68, %78 : vector<1x512xf32>
    %107 = vector.broadcast %106 : vector<1x512xf32> to vector<4x512xf32>
    %108 = arith.mulf %105, %107 : vector<4x512xf32>
    %c497_i32 = arith.constant 497 : i32
    %109 = tpu.dynamic_rotate %60 by %c497_i32 dim 1 : vector<4x512xf32>, i32 -> vector<4x512xf32>
    %110 = arith.mulf %88, %73 : vector<1x512xf32>
    %111 = vector.broadcast %110 : vector<1x512xf32> to vector<4x512xf32>
    %112 = arith.mulf %109, %111 : vector<4x512xf32>
    %c496_i32 = arith.constant 496 : i32
    %113 = tpu.dynamic_rotate %60 by %c496_i32 dim 1 : vector<4x512xf32>, i32 -> vector<4x512xf32>
    %114 = arith.mulf %88, %68 : vector<1x512xf32>
    %115 = vector.broadcast %114 : vector<1x512xf32> to vector<4x512xf32>
    %116 = arith.mulf %113, %115 : vector<4x512xf32>
    %c495_i32 = arith.constant 495 : i32
    %117 = tpu.dynamic_rotate %60 by %c495_i32 dim 1 : vector<4x512xf32>, i32 -> vector<4x512xf32>
    %118 = arith.mulf %88, %78 : vector<1x512xf32>
    %119 = vector.broadcast %118 : vector<1x512xf32> to vector<4x512xf32>
    %120 = arith.mulf %117, %119 : vector<4x512xf32>
    %121 = tpu.concatenate %92, %96, %100, %104, %60, %108, %112, %116, %120 in 0 : vector<4x512xf32>, vector<4x512xf32>, vector<4x512xf32>, vector<4x512xf32>, vector<4x512xf32>, vector<4x512xf32>, vector<4x512xf32>, vector<4x512xf32>, vector<4x512xf32> -> vector<36x512xf32>
    %c0_41 = arith.constant 0 : index
    %c0_42 = arith.constant 0 : index
    %122 = vector.load %arg6[%c0_41, %c0_42] : memref<4x36xbf16, #tpu.memory_space<vmem>>, vector<4x36xbf16>
    %123 = arith.truncf %121 : vector<36x512xf32> to vector<36x512xbf16>
    %cst_43 = arith.constant dense<0.000000e+00> : vector<4x512xf32>
    %124 = tpu.matmul %122, %123, %cst_43 {dimension_numbers = #tpu.dot_dimension_numbers<[1], [0], [0], [1], [0, 0, 1, 1], [], []>} : vector<4x36xbf16>, vector<36x512xbf16>, vector<4x512xf32> -> vector<4x512xf32>
    %cst_44 = arith.constant 0.000000e+00 : f32
    %125 = vector.broadcast %cst_44 : f32 to vector<4x512xf32>
    %126 = arith.maximumf %124, %125 : vector<4x512xf32>
    %c0_45 = arith.constant 0 : index
    %c0_46 = arith.constant 0 : index
    %127 = vector.load %arg7[%c0_45, %c0_46] : memref<4x1xf32, #tpu.memory_space<vmem>>, vector<4x1xf32>
    %c0_47 = arith.constant 0 : index
    %c0_48 = arith.constant 0 : index
    %128 = vector.load %arg8[%c0_47, %c0_48] : memref<4x1xf32, #tpu.memory_space<vmem>>, vector<4x1xf32>
    %cst_49 = arith.constant dense<0.000000e+00> : vector<4xf32>
    %129 = vector.multi_reduction <add>, %126, %cst_49 [1] : vector<4x512xf32> to vector<4xf32>
    %130 = vector.shape_cast %129 : vector<4xf32> to vector<4x1xf32>
    %131 = arith.mulf %126, %126 : vector<4x512xf32>
    %cst_50 = arith.constant dense<0.000000e+00> : vector<4xf32>
    %132 = vector.multi_reduction <add>, %131, %cst_50 [1] : vector<4x512xf32> to vector<4xf32>
    %133 = vector.shape_cast %132 : vector<4xf32> to vector<4x1xf32>
    %cst_51 = arith.constant 0.001953125 : f32
    %134 = vector.broadcast %cst_51 : f32 to vector<4x1xf32>
    %135 = arith.mulf %130, %134 : vector<4x1xf32>
    %cst_52 = arith.constant 0.001953125 : f32
    %136 = vector.broadcast %cst_52 : f32 to vector<4x1xf32>
    %137 = arith.mulf %133, %136 : vector<4x1xf32>
    %138 = arith.mulf %135, %135 : vector<4x1xf32>
    %139 = arith.subf %137, %138 : vector<4x1xf32>
    %cst_53 = arith.constant 9.99999974E-6 : f32
    %140 = vector.broadcast %cst_53 : f32 to vector<4x1xf32>
    %141 = arith.addf %139, %140 : vector<4x1xf32>
    %142 = math.rsqrt %141 : vector<4x1xf32>
    %143 = arith.mulf %127, %142 : vector<4x1xf32>
    %144 = arith.mulf %135, %143 : vector<4x1xf32>
    %145 = arith.subf %128, %144 : vector<4x1xf32>
    %c0_54 = arith.constant 0 : index
    %c0_55 = arith.constant 0 : index
    %146 = vector.load %arg9[%c0_54, %c0_55] : memref<16x4xf32, #tpu.memory_space<vmem>>, vector<16x4xf32>
    %147 = tpu.iota {dimensions = array<i32: 0>} : vector<4x4xi32>
    %148 = tpu.iota {dimensions = array<i32: 1>} : vector<4x4xi32>
    %149 = arith.cmpi eq, %147, %148 : vector<4x4xi32>
    %cst_56 = arith.constant 0.000000e+00 : f32
    %150 = vector.shape_cast %143 : vector<4x1xf32> to vector<4x1xf32>
    %151 = vector.broadcast %150 : vector<4x1xf32> to vector<4x4xf32>
    %152 = vector.broadcast %cst_56 : f32 to vector<4x4xf32>
    %153 = arith.select %149, %151, %152 : vector<4x4xi1>, vector<4x4xf32>
    %cst_57 = arith.constant dense<0.000000e+00> : vector<16x4xf32>
    %154 = tpu.matmul %146, %153, %cst_57 {dimension_numbers = #tpu.dot_dimension_numbers<[1], [0], [0], [1], [0, 0, 1, 1], [], []>} : vector<16x4xf32>, vector<4x4xf32>, vector<16x4xf32> -> vector<16x4xf32>
    %c0_58 = arith.constant 0 : index
    %c0_59 = arith.constant 0 : index
    %155 = vector.load %arg9[%c0_58, %c0_59] : memref<16x4xf32, #tpu.memory_space<vmem>>, vector<16x4xf32>
    %cst_60 = arith.constant dense<0.000000e+00> : vector<16x1xf32>
    %156 = tpu.matmul %155, %145, %cst_60 {dimension_numbers = #tpu.dot_dimension_numbers<[1], [0], [0], [1], [0, 0, 1, 1], [], []>} : vector<16x4xf32>, vector<4x1xf32>, vector<16x1xf32> -> vector<16x1xf32>
    %157 = arith.truncf %154 : vector<16x4xf32> to vector<16x4xbf16>
    %158 = arith.truncf %126 : vector<4x512xf32> to vector<4x512xbf16>
    %cst_61 = arith.constant dense<0.000000e+00> : vector<16x512xf32>
    %159 = tpu.matmul %157, %158, %cst_61 {dimension_numbers = #tpu.dot_dimension_numbers<[1], [0], [0], [1], [0, 0, 1, 1], [], []>} : vector<16x4xbf16>, vector<4x512xbf16>, vector<16x512xf32> -> vector<16x512xf32>
    %160 = vector.broadcast %156 : vector<16x1xf32> to vector<16x512xf32>
    %161 = arith.addf %159, %160 : vector<16x512xf32>
    %cst_62 = arith.constant 0.000000e+00 : f32
    %162 = vector.broadcast %cst_62 : f32 to vector<16x512xf32>
    %163 = arith.maximumf %161, %162 : vector<16x512xf32>
    %c0_63 = arith.constant 0 : index
    %c0_64 = arith.constant 0 : index
    %164 = vector.load %arg0[%c0_63, %c0_64] : memref<16x512xf32, #tpu.memory_space<vmem>>, vector<16x512xf32>
    %165 = arith.addf %163, %164 : vector<16x512xf32>
    %c0_65 = arith.constant 0 : index
    %c0_66 = arith.constant 0 : index
    %166 = vector.load %arg10[%c0_65, %c0_66] : memref<16x512xf32, #tpu.memory_space<vmem>>, vector<16x512xf32>
    tpu.vector_store %arg10[%c0_65, %c0_66], %165 {strides = array<i32>} : memref<16x512xf32, #tpu.memory_space<vmem>>, vector<16x512xf32>,
    return
  }
}

</mosaic_0001>

<bundles_post_ra>
// kernel: tpu_custom_call.1
= control target key start
LH: loop header
LB: loop body
LE: loop exit
PB: predicated region body
PF: predicated region fallthrough
CT: control target
= control target key end

     0   :  { %s1836_s0 = inlined_call_operand.vmem [shape: f32[16,512], index: 0, kind: input, shape index: {}]   ;;  %s1837_s1 = inlined_call_operand.vmem [shape: f32[16,1], index: 1, kind: input, shape index: {}]   ;;  %s1838_s2 = inlined_call_operand.vmem [shape: f32[16,1], index: 2, kind: input, shape index: {}]   ;;  %s1839_s3 = inlined_call_operand.vmem [shape: f32[4,16], index: 3, kind: input, shape index: {}]   ;;  %s1840_s4 = inlined_call_operand.vmem [shape: f32[4,1], index: 4, kind: input, shape index: {}]   ;;  %s1841_s5 = inlined_call_operand.vmem [shape: f32[4,1], index: 5, kind: input, shape index: {}]   ;;  %s1842_s6 = inlined_call_operand.vmem [shape: bf16[4,36], index: 6, kind: input, shape index: {}]   ;;  %s1843_s7 = inlined_call_operand.vmem [shape: f32[4,1], index: 7, kind: input, shape index: {}]   ;;  %s1844_s8 = inlined_call_operand.vmem [shape: f32[4,1], index: 8, kind: input, shape index: {}]   ;;  %s1845_s9 = inlined_call_operand.vmem [shape: f32[16,4], index: 9, kind: input, shape index: {}]   ;;  %s1846_s10 = inlined_call_operand.hbm [shape: f32[16,512], index: 10, kind: output, shape index: {}]  }
   0x1   :  { %v1331_v0 = vld [vmem:[%s1836_s0 + $0x20] sm:$0xff]  ;;  %v1336_v1 = vld [vmem:[%s1836_s0 + $0x28] sm:$0xff]  ;;  %v1341_v2 = vld [vmem:[%s1836_s0 + $0x30] sm:$0xff] }
   0x2   :  { %v1346_v3 = vld [vmem:[%s1836_s0 + $0x38] sm:$0xff]  ;;  %v54_v4 = vadd.f32 %v1336_v1, %v1331_v0  ;;  %v63_v5 = vmul.f32 %v1331_v0, %v1331_v0  ;;  %v64_v6 = vmul.f32 %v1336_v1, %v1336_v1  ;;  %v65_v7 = vmul.f32 %v1341_v2, %v1341_v2  ;;  %v1359_v8 = vld [vmem:[%s1836_s0] sm:$0xff]  ;;  %v1364_v9 = vld [vmem:[%s1836_s0 + $0x8] sm:$0xff] }
   0x3   :  { %v1369_v10 = vld [vmem:[%s1836_s0 + $0x10] sm:$0xff]  ;;  %v1374_v11 = vld [vmem:[%s1836_s0 + $0x18] sm:$0xff]  ;;  %v49_v12 = vadd.f32 %v1364_v9, %v1359_v8  ;;  %v59_v13 = vmul.f32 %v1359_v8, %v1359_v8  ;;  %v60_v14 = vmul.f32 %v1364_v9, %v1364_v9 }
   0x4   :  { %15 = vsyncpa [#allocation3], 0  ;;  %v55_v15 = vadd.f32 %v54_v4, %v1341_v2  ;;  %v66_v16 = vmul.f32 %v1346_v3, %v1346_v3  ;;  %v72_v17 = vadd.f32 %v64_v6, %v63_v5  ;;  %v61_v18 = vmul.f32 %v1369_v10, %v1369_v10  ;;  %v46_v44 = vld [vmem:[%s1837_s1 + $0x8] sm:$0xff]  ;;  %v45_v48 = vld [vmem:[%s1837_s1] sm:$0xff]  ;;  %s1264_s20 = smov 127   ;;  %s1265_s21 = smov 113  }
   0x5   :  { %v50_v19 = vadd.f32 %v49_v12, %v1369_v10  ;;  %v67_v20 = vadd.f32 %v60_v14, %v59_v13  ;;  %v62_v23 = vmul.f32 %v1374_v11, %v1374_v11  ;;  %v1259_v28 = vmov 0   ;;  %v48_v47 = vld [vmem:[%s1838_s2 + $0x8] sm:$0xff]  ;;  %v47_v53 = vld [vmem:[%s1838_s2] sm:$0xff]  ;;  %s1266_s22 = smov 16   ;;  %s1267_s23 = smov 1  }
   0x6   :  { %v56_v21 = vadd.f32 %v55_v15, %v1346_v3  ;;  %v73_v22 = vadd.f32 %v72_v17, %v65_v7  ;;  %1219 = vset.pattern.permute.xlu0 %v1259_v28  ;;  %1220 = vset.pattern.permute.xlu1 %v1259_v28  ;;  %v1260_v29 = vmov 0.0   ;;  %vm1261_vm0 = vmmov 0   ;;  %v95_v56 = vld [vmem:[%s1839_s3] sm:$0xf]  ;;  %s1268_s24 = smov 17   ;;  %s1269_s25 = smov 15  }
   0x7   :  { %v68_v24 = vadd.f32 %v67_v20, %v61_v18  ;;  %v51_v26 = vadd.f32 %v50_v19, %v1374_v11  ;;  %1188 = vmatprep.subr.mxu1 %v1260_v29  ;;  %1181 = vmatprep.subr.mxu0 %v1260_v29  ;;  %vm115_vm1 = vcmask 130048   ;;  %v263_v57 = vpack.c.bf16 %v1346_v3, %v1374_v11  ;;  %s1270_s2 = smov [#allocation2]  }
   0x8   :  { %57 = vadd.xlane.f32.xlu0 %v56_v21  ;;  %v74_v25 = vadd.f32 %v73_v22, %v66_v16  ;;  %1192 = vmatprep.mubr.msk.f32.mxu1 %vm1261_vm0, %v1260_v29  ;;  %v96_v58 = vlaneseq  ;;  %v261_v63 = vpack.c.bf16 %v1336_v1, %v1364_v9  ;;  %v260_v4 = vpack.c.bf16 %v1331_v0, %v1359_v8  ;;  %s1138_s3 = sshll.u32 %s1270_s2, 4  ;;  %s1139_s3 = int_to_ptr.vmem [resolvable:$true] %s1138_s3 }
   0x9   :  { %v69_v27 = vadd.f32 %v68_v24, %v62_v23  ;;  %1185 = vmatprep.mubr.msk.f32.mxu0 %vm1261_vm0, %v1260_v29  ;;  %v262_v5 = vpack.c.bf16 %v1341_v2, %v1369_v10  ;;  %vm360_vm4 = vcmask 1043456   ;;  %vm690_vm10 = vcmask 1041408   ;;  %p1242_p1 = scmp.lt.s32.totalorder %s1139_s3, %s1139_s3 }
   0xa   :  { %75 = vadd.xlane.f32.xlu1 %v74_v25  ;;  %v1418_v59 = vshrl.u32 %v96_v58, 7  ;;  %v1421_v61 = vand.u32 127, %v96_v58 }
   0xc   :  { %52 = vadd.xlane.f32.xlu0 %v51_v26  ;;  %v98_v60 = vadd.s32 8, %v1418_v59  ;;  %vm101_vm3 = vcmp.eq.s32.totalorder %v1418_v59, %v1421_v61  ;;  %vm596_vm9 = vcmp.lt.s32.totalorder %v1421_v61, 111  ;;  %vm541_vm15 = vcmp.lt.s32.totalorder %v1421_v61, 127 }
   0xd   :  { %vm579_vm0 = vcmp.lt.s32.totalorder %v1421_v61, 112 }
   0xe   :  { %70 = vadd.xlane.f32.xlu1 %v69_v27  ;;  %vm102_vm2 = vcmp.eq.s32.totalorder %v98_v60, %v1421_v61 }
  0x91   :  { %v58_v30 = vpop.xlane.xlu0 %57 }
  0x92   :  { %v78_v31 = vmul.f32 0.001953125, %v58_v30 }
  0x93   :  { %v76_v32 = vpop.xlane.xlu1 %75 }
  0x94   :  { %v82_v33 = vmul.f32 %v78_v31, %v78_v31  ;;  %v80_v34 = vmul.f32 0.001953125, %v76_v32 }
  0x95   :  { %v53_v35 = vpop.xlane.xlu0 %52 }
  0x96   :  { %v84_v36 = vsub.f32 %v80_v34, %v82_v33  ;;  %v77_v37 = vmul.f32 0.001953125, %v53_v35 }
  0x97   :  { %v71_v38 = vpop.xlane.xlu1 %70 }
  0x98   :  { %v86_v39 = vadd.f32 1e-05, %v84_v36  ;;  %v81_v40 = vmul.f32 %v77_v37, %v77_v37  ;;  %v79_v41 = vmul.f32 0.001953125, %v71_v38 }
  0x9a   :  { %1221 = vrsqrt.f32 %v86_v39  ;;  %v83_v42 = vsub.f32 %v79_v41, %v81_v40 }
  0x9c   :  { %v85_v43 = vadd.f32 1e-05, %v83_v42 }
  0x9e   :  { %1223 = vrsqrt.f32 %v85_v43 }
  0xa7   :  { %v1222_v45 = vpop.eup %1221 }
  0xa8   :  { %v90_v46 = vmul.f32 %v1222_v45, %v46_v44 }
  0xaa   :  { %110 = vperm.xlu0 %1219, %v90_v46   ;;  %v92_v49 = vmul.f32 %v90_v46, %v78_v31 }
  0xab   :  { %v1224_v50 = vpop.eup %1223 }
  0xac   :  { %v94_v51 = vsub.f32 %v48_v47, %v92_v49  ;;  %v89_v52 = vmul.f32 %v1224_v50, %v45_v48 }
  0xae   :  { %1189 = vmatpush3.msra.mxu1 %v94_v51  ;;  %105 = vperm.xlu1 %1220, %v89_v52   ;;  %v91_v54 = vmul.f32 %v89_v52, %v77_v37  ;;  %v358_v52 = vld [vmem:[%s1840_s4] sm:$0xf]  ;;  %s1262_s4 = smov 111  }
  0xaf   :  { %1190 = vmatprep.subr.mxu1 %v1260_v29 }
  0xb0   :  { %v93_v55 = vsub.f32 %v47_v53, %v91_v54 }
  0xb2   :  { %1191 = vmatpush3.msra.mxu1 %v93_v55  ;;  %v359_v55 = vld [vmem:[%s1841_s5] sm:$0xf]  ;;  %s1263_s5 = smov 112  }
  0xb3   :  { %1193 = vmatmul.mubr.msk.f32.vlgmr.msra.gmra.mxu1 %vm115_vm1, %v95_v56  ;;  %327 = vmatprep.subr.bf16.mxu1 %v263_v57 }
  0xb4   :  { %345 = vmatprep.mubr.bf16.mxu1 %v1259_v28  ;;  %328 = vmatpush1.bf16.msra.mxu1 %v262_v5 }
 0x125   :  { %v111_v62 = vpop.permute.xlu0 %110 }
 0x126   :  { %1182 = vmatpush3.msk.msra.mxu0 %vm102_vm2, %v111_v62 }
 0x127   :  { %1183 = vmatprep.subr.mxu0 %v1260_v29 }
 0x129   :  { %v106_v3 = vpop.permute.xlu1 %105 }
 0x12a   :  { %1184 = vmatpush3.msk.msra.mxu0 %vm101_vm3, %v106_v3 }
 0x12b   :  { %1186 = vmatmul.mubr.msk.f32.vlgmr.msra.gmra.mxu0 %vm115_vm1, %v95_v56  ;;  %286 = vmatprep.subr.bf16.mxu0 %v261_v63 }
 0x12c   :  { %304 = vmatprep.mubr.bf16.mxu0 %v1259_v28  ;;  %287 = vmatpush1.bf16.msra.mxu0 %v260_v4 }
 0x173   :  { %v255_v6 = vpop.f32.mrf.mxu1 }
 0x174   :  { %266 = vperm.xlu1 %1220, %v255_v6  }
 0x175   :  { %v1194_v1 = vpop.f32.mrf.mxu1 }
 0x1eb   :  { %v185_v7 = vpop.f32.mrf.mxu0 }
 0x1ec   :  { %v259_v9 = vpack.c.bf16 %v185_v7, %v185_v7 }
 0x1ed   :  { %v1187_v11 = vpop.f32.mrf.mxu0 }
 0x1ee   :  { %1153 = vmatmul.mubr.msk.bf16.vlgmr.msra.gmra.mxu0 %vm115_vm1, %v259_v9  ;;  %1154 = vmatmul.mubr.msk.bf16.vlgmr.msra.gmra.mxu1 %vm115_vm1, %v259_v9  ;;  %v417_v9 = vshra.s32 %v1421_v61, 4  ;;  %v410_v11 = vadd.s32 128, %v1421_v61 }
 0x1ef   :  { %735 = vmatprep.mubr.bf16.mxu0 %v1259_v28  ;;  %776 = vmatprep.mubr.bf16.mxu1 %v1259_v28  ;;  %v267_v0 = vpop.permute.xlu1 %266 }
 0x2ae   :  { %v306_v8 = vpop.f32.mrf.mxu0  ;;  %v347_v12 = vpop.f32.mrf.mxu1 }
 0x2af   :  { %v307_v2 = vadd.f32 %v306_v8, %v267_v0  ;;  %v348_v10 = vadd.f32 %v347_v12, %v267_v0  ;;  %v1499_v8 = vand.u32 15, %v417_v9  ;;  %v418_v12 = vshra.s32 %v410_v11, 4 }
 0x2b0   :  { %v308_v13 = vpop.f32.mrf.mxu0  ;;  %v349_v14 = vpop.f32.mrf.mxu1 }
 0x2b1   :  { %v354_v15 = vmax.f32 %v307_v2, 0.0  ;;  %v356_v16 = vmax.f32 %v348_v10, 0.0  ;;  %v309_v17 = vadd.f32 %v308_v13, %v267_v0  ;;  %v350_v18 = vadd.f32 %v349_v14, %v267_v0 }
 0x2b2   :  { %v310_v19 = vpop.f32.mrf.mxu0  ;;  %v351_v20 = vpop.f32.mrf.mxu1  ;;  %v413_v0 = vand.u32 15, %v1421_v61  ;;  %vm449_vm6 = vcmp.le.s32.totalorder %v1499_v8, 14  ;;  %v414_v2 = vand.u32 15, %v410_v11  ;;  %v1504_v10 = vand.u32 15, %v418_v12 }
 0x2b3   :  { %v370_v21 = vmul.f32 %v354_v15, %v354_v15  ;;  %v355_v22 = vmax.f32 %v309_v17, 0.0  ;;  %v357_v23 = vmax.f32 %v350_v18, 0.0  ;;  %v361_v26 = vsel %vm360_vm4, %v354_v15, 0.0 }
 0x2b4   :  { %v311_v24 = vpop.f32.mrf.mxu0  ;;  %v352_v25 = vpop.f32.mrf.mxu1  ;;  %v372_v27 = vmul.f32 %v356_v16, %v356_v16  ;;  %v364_v33 = vsel %vm360_vm4, %v356_v16, 0.0  ;;  %vm433_vm5 = vcmp.le.s32.totalorder %v413_v0, 14  ;;  %v1510_v14 = vsel %vm449_vm6, 1.0, %v1260_v29 }
 0x2b5   :  { %v362_v30 = vsel %vm360_vm4, %v355_v22, 0.0  ;;  %v371_v31 = vmul.f32 %v355_v22, %v355_v22  ;;  %v373_v34 = vmul.f32 %v357_v23, %v357_v23  ;;  %v374_v35 = vsel %vm360_vm4, %v370_v21, 0.0 }
 0x2b6   :  { %v363_v32 = vadd.f32 %v362_v30, %v361_v26  ;;  %v366_v39 = vsel %vm360_vm4, %v357_v23, 0.0  ;;  %v377_v40 = vsel %vm360_vm4, %v372_v27, 0.0  ;;  %v1507_v13 = vsel %vm433_vm5, 1.0, %v1260_v29 }
 0x2b7   :  { %v375_v36 = vsel %vm360_vm4, %v371_v31, 0.0  ;;  %v379_v43 = vsel %vm360_vm4, %v373_v34, 0.0  ;;  %vm434_vm7 = vcmp.le.s32.totalorder %v414_v2, 14  ;;  %vm450_vm8 = vcmp.le.s32.totalorder %v1504_v10, 14 }
 0x2b8   :  { %v365_v37 = vadd.f32 %v364_v33, %v363_v32  ;;  %v376_v38 = vadd.f32 %v375_v36, %v374_v35  ;;  %v601_v17 = vmul.f32 %v1510_v14, %v1507_v13  ;;  %v1523_v18 = vsel %vm434_vm7, 1.0, %v1260_v29 }
 0x2b9   :  { %v454_v19 = vsel %vm450_vm8, 1.0, %v1260_v29  ;;  %vm426_vm1 = vcmp.ge.s32.totalorder %v414_v2, 1  ;;  %vm425_vm2 = vcmp.ge.s32.totalorder %v413_v0, 1  ;;  %vm558_vm5 = vcmp.lt.s32.totalorder %v1421_v61, 113 }
 0x2ba   :  { %v367_v41 = vadd.f32 %v366_v39, %v365_v37  ;;  %v378_v42 = vadd.f32 %v377_v40, %v376_v38  ;;  %v602_v26 = vmul.f32 %v454_v19, %v1523_v18  ;;  %vm441_vm6 = vcmp.ge.s32.totalorder %v1499_v8, 1 }
 0x2bb   :  { %vm442_vm7 = vcmp.ge.s32.totalorder %v1504_v10, 1  ;;  %vm486_vm8 = vcmp.lt.s32.totalorder %v1421_v61, 16 }
 0x2bc   :  { %368 = vadd.xlane.f32.xlu1 %v367_v41  ;;  %v380_v44 = vadd.f32 %v379_v43, %v378_v42 }
 0x2be   :  { %381 = vadd.xlane.f32.xlu0 %v380_v44 }
 0x345   :  { %v369_v45 = vpop.xlane.xlu1 %368 }
 0x346   :  { %v383_v46 = vmul.f32 0.001953125, %v369_v45 }
 0x347   :  { %v382_v47 = vpop.xlane.xlu0 %381 }
 0x348   :  { %v385_v48 = vmul.f32 %v383_v46, %v383_v46  ;;  %v384_v49 = vmul.f32 0.001953125, %v382_v47 }
 0x34a   :  { %v386_v50 = vsub.f32 %v384_v49, %v385_v48 }
 0x34c   :  { %v387_v51 = vadd.f32 1e-05, %v386_v50 }
 0x34e   :  { %1225 = vrsqrt.f32 %v387_v51 }
 0x35b   :  { %v1226_v53 = vpop.eup %1225 }
 0x35c   :  { %v389_v54 = vmul.f32 %v1226_v53, %v358_v52 }
 0x35e   :  { %394 = vperm.xlu1 %1220, %v389_v54   ;;  %v390_v56 = vmul.f32 %v389_v54, %v383_v46 }
 0x360   :  { %v391_v57 = vsub.f32 %v359_v55, %v390_v56 }
 0x362   :  { %403 = vperm.xlu1 %1220, %v391_v57  }
 0x3d9   :  { %v395_v58 = vpop.permute.xlu1 %394 }
 0x3da   :  { %v397_v60 = vmul.f32 %v395_v58, %v354_v15  ;;  %v398_v62 = vmul.f32 %v395_v58, %v355_v22  ;;  %v399_v5 = vmul.f32 %v395_v58, %v356_v16  ;;  %v400_v1 = vmul.f32 %v395_v58, %v357_v23 }
 0x3db   :  { %v1514_v15 = vadd.s32 256, %v1421_v61  ;;  %v1517_v16 = vadd.s32 384, %v1421_v61  ;;  %v1584_v58 = vsel %vm426_vm1, 1.0, %v1260_v29  ;;  %vm686_vm1 = vcmask 293888  }
 0x3dc   :  { %v564_v2 = vmul.f32 %v454_v19, %v1584_v58 }
 0x3dd   :  { %v404_v63 = vpop.permute.xlu1 %403  ;;  %v419_v22 = vshra.s32 %v1514_v15, 4  ;;  %v420_v23 = vshra.s32 %v1517_v16, 4  ;;  %v415_v27 = vand.u32 15, %v1514_v15  ;;  %v416_v32 = vand.u32 15, %v1517_v16 }
 0x3de   :  { %v1456_v3 = vadd.f32 %v404_v63, %v397_v60  ;;  %v1458_v4 = vadd.f32 %v404_v63, %v398_v62  ;;  %v1462_v6 = vadd.f32 %v404_v63, %v399_v5  ;;  %v1470_v7 = vadd.f32 %v404_v63, %v400_v1 }
 0x3df   :  { %v1535_v33 = vand.u32 15, %v419_v22  ;;  %v1537_v34 = vand.u32 15, %v420_v23  ;;  %vm435_vm11 = vcmp.le.s32.totalorder %v415_v27, 14  ;;  %vm436_vm12 = vcmp.le.s32.totalorder %v416_v32, 14 }
 0x3e0   :  { %590 = vrot.lane.b32.xlu1 %v1458_v4, %s1262_s4  ;;  %588 = vrot.lane.b32.xlu0 %v1456_v3, %s1262_s4  ;;  %v1552_v42 = vsel %vm435_vm11, 1.0, %v1260_v29  ;;  %v1555_v43 = vsel %vm436_vm12, 1.0, %v1260_v29  ;;  %vm465_vm11 = vcmp.lt.s32.totalorder %v1421_v61, 17  ;;  %vm427_vm12 = vcmp.ge.s32.totalorder %v415_v27, 1 }
 0x3e1   :  { %vm451_vm13 = vcmp.le.s32.totalorder %v1535_v33, 14  ;;  %vm452_vm14 = vcmp.le.s32.totalorder %v1537_v34, 14 }
 0x3e2   :  { %v1558_v44 = vsel %vm451_vm13, 1.0, %v1260_v29  ;;  %v1561_v45 = vsel %vm452_vm14, 1.0, %v1260_v29  ;;  %vm428_vm13 = vcmp.ge.s32.totalorder %v416_v32, 1  ;;  %vm503_vm14 = vcmp.lt.s32.totalorder %v1421_v61, 15 }
 0x3e3   :  { %v603_v48 = vmul.f32 %v1558_v44, %v1552_v42  ;;  %v604_v49 = vmul.f32 %v1561_v45, %v1555_v43 }
 0x3e4   :  { %592 = vrot.lane.b32.xlu1 %v1462_v6, %s1262_s4  ;;  %575 = vrot.lane.b32.xlu0 %v1462_v6, %s1263_s5 }
 0x3e8   :  { %535 = vrot.lane.b32.xlu1 %v1458_v4, %s1264_s20  ;;  %571 = vrot.lane.b32.xlu0 %v1456_v3, %s1263_s5 }
 0x3ec   :  { %537 = vrot.lane.b32.xlu1 %v1462_v6, %s1264_s20  ;;  %554 = vrot.lane.b32.xlu0 %v1462_v6, %s1265_s21 }
 0x3f0   :  { %573 = vrot.lane.b32.xlu1 %v1458_v4, %s1263_s5  ;;  %594 = vrot.lane.b32.xlu0 %v1470_v7, %s1262_s4 }
 0x3f4   :  { %533 = vrot.lane.b32.xlu1 %v1456_v3, %s1264_s20  ;;  %480 = vrot.lane.b32.xlu0 %v1458_v4, %s1266_s22 }
 0x3f8   :  { %552 = vrot.lane.b32.xlu1 %v1458_v4, %s1265_s21  ;;  %518 = vrot.lane.b32.xlu0 %v1458_v4, %s1267_s23 }
 0x3fc   :  { %550 = vrot.lane.b32.xlu1 %v1456_v3, %s1265_s21  ;;  %577 = vrot.lane.b32.xlu0 %v1470_v7, %s1263_s5 }
 0x400   :  { %478 = vrot.lane.b32.xlu1 %v1456_v3, %s1266_s22  ;;  %522 = vrot.lane.b32.xlu0 %v1470_v7, %s1267_s23 }
 0x404   :  { %516 = vrot.lane.b32.xlu1 %v1456_v3, %s1267_s23  ;;  %459 = vrot.lane.b32.xlu0 %v1458_v4, %s1268_s24 }
 0x408   :  { %539 = vrot.lane.b32.xlu1 %v1470_v7, %s1264_s20  ;;  %497 = vrot.lane.b32.xlu0 %v1458_v4, %s1269_s25 }
 0x40c   :  { %484 = vrot.lane.b32.xlu1 %v1470_v7, %s1266_s22  ;;  %463 = vrot.lane.b32.xlu0 %v1470_v7, %s1268_s24 }
 0x410   :  { %457 = vrot.lane.b32.xlu1 %v1456_v3, %s1268_s24  ;;  %482 = vrot.lane.b32.xlu0 %v1462_v6, %s1266_s22 }
 0x414   :  { %495 = vrot.lane.b32.xlu1 %v1456_v3, %s1269_s25  ;;  %461 = vrot.lane.b32.xlu0 %v1462_v6, %s1268_s24 }
 0x418   :  { %556 = vrot.lane.b32.xlu1 %v1470_v7, %s1265_s21 }
 0x41c   :  { %501 = vrot.lane.b32.xlu1 %v1470_v7, %s1269_s25 }
 0x420   :  { %520 = vrot.lane.b32.xlu1 %v1462_v6, %s1267_s23 }
 0x424   :  { %499 = vrot.lane.b32.xlu1 %v1462_v6, %s1269_s25  ;;  %s1237_s25 = scalar_lea.vmem %s1139_s3, 1024 }
 0x425   :  { %p1238_p0 = scmp.ne.s32.totalorder %s1139_s3, %s1237_s25  ;;  %p1243_p2 = scmp.lt.s32.totalorder %s1237_s25, %s1237_s25 }
 0x427   :  { %p1244_p3 = por %p1243_p2, %p1242_p1 }
 0x429   :  { %p1245_p4 = pnand %p1244_p3, %p1238_p0 }
 0x452   :  { %v591_v20 = vpop.permute.xlu1 %590  ;;  %v589_v21 = vpop.permute.xlu0 %588 }
 0x453   :  { %v599_v24 = vsel %vm596_vm9, %v589_v21, %v591_v20 }
 0x454   :  { %v605_v25 = vmul.f32 %v601_v17, %v599_v24 }
 0x456   :  { %v593_v30 = vpop.permute.xlu1 %592  ;;  %v1532_v31 = vpop.permute.xlu0 %575  ;;  %v682_v36 = vpack.c.bf16 %v605_v25, %v605_v25 }
 0x457   :  { %v598_v35 = vsel %vm596_vm9, %v591_v20, %v593_v30  ;;  %v1601_v20 = vsel %vm425_vm2, 1.0, %v1260_v29  ;;  %vm830_vm2 = vcmask 31744  }
 0x458   :  { %v606_v37 = vmul.f32 %v602_v26, %v598_v35  ;;  %v692_v41 = vsel %vm690_vm10, %v682_v36, 0 }
 0x45a   :  { %v683_v38 = vpack.c.bf16 %v606_v37, %v606_v37  ;;  %v536_v39 = vpop.permute.xlu1 %535  ;;  %v1543_v40 = vpop.permute.xlu0 %571 }
 0x45c   :  { %1155 = vmatprep.subr.msk.bf16.mxu0 %vm690_vm10, %v683_v38 }
 0x45d   :  { %714 = vmatpush1.bf16.msra.mxu0 %v692_v41 }
 0x45e   :  { %v1563_v46 = vpop.permute.xlu1 %537  ;;  %v1565_v47 = vpop.permute.xlu0 %554 }
 0x45f   :  { %v543_v52 = vsel %vm541_vm15, %v536_v39, %v1563_v46 }
 0x460   :  { %v547_v60 = vmul.f32 %v543_v52, %v1523_v18 }
 0x462   :  { %v574_v50 = vpop.permute.xlu1 %573  ;;  %v595_v51 = vpop.permute.xlu0 %594  ;;  %v638_v0 = vrot.slane %v547_v60, 4  ;;  %v445_v60 = vsel %vm441_vm6, 1.0, %v1260_v29 }
 0x463   :  { %v597_v53 = vsel %vm596_vm9, %v593_v30, %v595_v51  ;;  %v600_v54 = vsel %vm596_vm9, %v595_v51, %v589_v21  ;;  %v581_v57 = vsel %vm579_vm0, %v574_v50, %v1532_v31  ;;  %v582_v17 = vsel %vm579_vm0, %v1543_v40, %v574_v50 }
 0x464   :  { %v607_v55 = vmul.f32 %v603_v48, %v597_v53  ;;  %v608_v56 = vmul.f32 %v604_v49, %v600_v54  ;;  %v585_v11 = vmul.f32 %v581_v57, %v454_v19  ;;  %v584_v19 = vmul.f32 %v582_v17, %v1510_v14 }
 0x465   :  { %v563_v30 = vmul.f32 %v1510_v14, %v1601_v20  ;;  %v666_v38 = vsel %vm360_vm4, %v1458_v4, %v638_v0  ;;  %vm524_vm9 = vcmp.lt.s32.totalorder %v1421_v61, 1  ;;  %v470_v10 = vmul.f32 %v445_v60, %v1601_v20 }
 0x466   :  { %v684_v62 = vpack.c.bf16 %v607_v55, %v607_v55  ;;  %v685_v63 = vpack.c.bf16 %v608_v56, %v608_v56  ;;  %v534_v5 = vpop.permute.xlu1 %533  ;;  %v1587_v1 = vpop.permute.xlu0 %480  ;;  %v650_v25 = vrot.slane %v585_v11, 4  ;;  %v649_v49 = vrot.slane %v584_v19, 4 }
 0x467   :  { %v544_v9 = vsel %vm541_vm15, %v534_v5, %v536_v39 }
 0x468   :  { %1157 = vmatprep.subr.msk.bf16.mxu1 %vm690_vm10, %v685_v63  ;;  %v698_v12 = vsel %vm690_vm10, %v684_v62, 0  ;;  %v546_v21 = vmul.f32 %v544_v9, %v1507_v13  ;;  %v446_v62 = vsel %vm442_vm7, 1.0, %v1260_v29 }
 0x469   :  { %755 = vmatpush1.bf16.msra.mxu1 %v698_v12  ;;  %v471_v12 = vmul.f32 %v446_v62, %v1584_v58  ;;  %v509_v27 = vmul.f32 %v446_v62, %v1523_v18 }
 0x46a   :  { %v553_v22 = vpop.permute.xlu1 %552  ;;  %v1604_v23 = vpop.permute.xlu0 %518  ;;  %v637_v35 = vrot.slane %v546_v21, 4 }
 0x46b   :  { %v560_v24 = vsel %vm558_vm5, %v553_v22, %v1565_v47 }
 0x46c   :  { %v568_v26 = vmul.f32 %v564_v2, %v560_v24  ;;  %v665_v14 = vsel %vm360_vm4, %v1456_v3, %v637_v35 }
 0x46e   :  { %v1612_v36 = vpop.permute.xlu1 %550  ;;  %v578_v37 = vpop.permute.xlu0 %577  ;;  %v670_v39 = vsel %vm360_vm4, %v568_v26, %v650_v25 }
 0x46f   :  { %v561_v41 = vsel %vm558_vm5, %v1612_v36, %v553_v22  ;;  %v679_v48 = vpack.c.bf16 %v670_v39, %v666_v38  ;;  %v580_v17 = vsel %vm579_vm0, %v1532_v31, %v578_v37  ;;  %v583_v0 = vsel %vm579_vm0, %v578_v37, %v1543_v40 }
 0x470   :  { %v567_v50 = vmul.f32 %v563_v30, %v561_v41  ;;  %v1673_v22 = vsel %vm427_vm12, 1.0, %v1260_v29  ;;  %v586_v24 = vmul.f32 %v580_v17, %v1558_v44  ;;  %v587_v16 = vmul.f32 %v583_v0, %v1561_v45 }
 0x471   :  { %715 = vmatprep.subr.bf16.mxu0 %v679_v48  ;;  %vm444_vm0 = vcmp.ge.s32.totalorder %v1537_v34, 1  ;;  %v565_v25 = vmul.f32 %v1558_v44, %v1673_v22  ;;  %v508_v38 = vmul.f32 %v445_v60, %v1507_v13 }
 0x472   :  { %v669_v51 = vsel %vm360_vm4, %v567_v50, %v649_v49  ;;  %v479_v52 = vpop.permute.xlu1 %478  ;;  %v1623_v53 = vpop.permute.xlu0 %522  ;;  %v652_v44 = vrot.slane %v587_v16, 4 }
 0x473   :  { %v678_v54 = vpack.c.bf16 %v669_v51, %v665_v14  ;;  %v489_v63 = vsel %vm486_vm8, %v479_v52, %v1587_v1  ;;  %v651_v14 = vrot.slane %v586_v24, 4 }
 0x475   :  { %716 = vmatpush1.bf16.msra.mxu0 %v678_v54 }
 0x476   :  { %v517_v4 = vpop.permute.xlu1 %516  ;;  %v1625_v55 = vpop.permute.xlu0 %459 }
 0x477   :  { %v527_v8 = vsel %vm524_vm9, %v517_v4, %v1604_v23  ;;  %v528_v39 = vsel %vm524_vm9, %v1623_v53, %v517_v4 }
 0x478   :  { %v530_v15 = vmul.f32 %v527_v8, %v1584_v58  ;;  %v432_v58 = vsel %vm428_vm13, 1.0, %v1260_v29 }
 0x479   :  { %v566_v26 = vmul.f32 %v1561_v45, %v432_v58 }
 0x47a   :  { %v540_v56 = vpop.permute.xlu1 %539  ;;  %v1627_v57 = vpop.permute.xlu0 %497  ;;  %v626_v35 = vrot.slane %v530_v15, 4 }
 0x47b   :  { %v542_v9 = vsel %vm541_vm15, %v1563_v46, %v540_v56  ;;  %v545_v11 = vsel %vm541_vm15, %v540_v56, %v534_v5  ;;  %v492_v5 = vmul.f32 %v489_v63, %v446_v62  ;;  %vm443_vm15 = vcmp.ge.s32.totalorder %v1535_v33, 1 }
 0x47c   :  { %v548_v31 = vmul.f32 %v542_v9, %v1552_v42  ;;  %v549_v40 = vmul.f32 %v545_v11, %v1555_v43  ;;  %v529_v62 = vmul.f32 %v528_v39, %v1601_v20 }
 0x47d   :  { %v614_v30 = vrot.slane %v492_v5, 4 }
 0x47e   :  { %v1633_v3 = vpop.permute.xlu1 %484  ;;  %v1659_v21 = vpop.permute.xlu0 %463  ;;  %v639_v41 = vrot.slane %v548_v31, 4  ;;  %v640_v48 = vrot.slane %v549_v40, 4 }
 0x47f   :  { %v490_v49 = vsel %vm486_vm8, %v1633_v3, %v479_v52 }
 0x480   :  { %v491_v63 = vmul.f32 %v490_v49, %v445_v60  ;;  %v667_v11 = vsel %vm360_vm4, %v1462_v6, %v639_v41 }
 0x482   :  { %v458_v2 = vpop.permute.xlu1 %457  ;;  %v483_v50 = vpop.permute.xlu0 %482 }
 0x483   :  { %v468_v46 = vsel %vm465_vm11, %v458_v2, %v1625_v55  ;;  %v469_v13 = vsel %vm465_vm11, %v1659_v21, %v458_v2  ;;  %v488_v20 = vsel %vm486_vm8, %v1587_v1, %v483_v50  ;;  %v487_v33 = vsel %vm486_vm8, %v483_v50, %v1633_v3 }
 0x484   :  { %v475_v32 = vmul.f32 %v471_v12, %v468_v46  ;;  %v447_v12 = vsel %vm443_vm15, 1.0, %v1260_v29  ;;  %v474_v2 = vmul.f32 %v470_v10, %v469_v13  ;;  %v625_v10 = vrot.slane %v529_v62, 4 }
 0x485   :  { %v613_v46 = vrot.slane %v491_v63, 4  ;;  %v493_v15 = vmul.f32 %v488_v20, %v447_v12  ;;  %v472_v1 = vmul.f32 %v447_v12, %v1673_v22 }
 0x486   :  { %v496_v19 = vpop.permute.xlu1 %495  ;;  %v658_v45 = vsel %vm360_vm4, %v475_v32, %v614_v30  ;;  %v462_v34 = vpop.permute.xlu0 %461  ;;  %v510_v30 = vmul.f32 %v447_v12, %v1552_v42 }
 0x487   :  { %v506_v18 = vsel %vm503_vm14, %v496_v19, %v1627_v57  ;;  %v657_v31 = vsel %vm360_vm4, %v474_v2, %v613_v46  ;;  %v466_v3 = vsel %vm465_vm11, %v462_v34, %v1659_v21  ;;  %v467_v32 = vsel %vm465_vm11, %v1625_v55, %v462_v34  ;;  %v673_v55 = vld [vmem:[%s1842_s6] sm:$0x3] }
 0x488   :  { %v513_v37 = vmul.f32 %v509_v27, %v506_v18  ;;  %v615_v39 = vrot.slane %v493_v15, 4 }
 0x48a   :  { %v557_v51 = vpop.permute.xlu1 %556  ;;  %v662_v54 = vsel %vm360_vm4, %v513_v37, %v626_v35  ;;  %v476_v37 = vmul.f32 %v472_v1, %v467_v32 }
 0x48b   :  { %v559_v4 = vsel %vm558_vm5, %v1565_v47, %v557_v51  ;;  %v562_v52 = vsel %vm558_vm5, %v557_v51, %v1612_v36  ;;  %v675_v56 = vpack.c.bf16 %v662_v54, %v658_v45  ;;  %v448_v47 = vsel %vm444_vm0, 1.0, %v1260_v29 }
 0x48c   :  { %v569_v8 = vmul.f32 %v565_v25, %v559_v4  ;;  %v570_v9 = vmul.f32 %v566_v26, %v562_v52  ;;  %v668_v36 = vsel %vm360_vm4, %v1470_v7, %v640_v48  ;;  %v473_v27 = vmul.f32 %v448_v47, %v432_v58 }
 0x48d   :  { %717 = vmatprep.subr.bf16.mxu0 %v675_v56  ;;  %v494_v40 = vmul.f32 %v487_v33, %v448_v47  ;;  %v511_v35 = vmul.f32 %v448_v47, %v1555_v43  ;;  %v659_v49 = vsel %vm360_vm4, %v476_v37, %v615_v39 }
 0x48e   :  { %v671_v60 = vsel %vm360_vm4, %v569_v8, %v651_v14  ;;  %v502_v6 = vpop.permute.xlu1 %501  ;;  %v672_v17 = vsel %vm360_vm4, %v570_v9, %v652_v44 }
 0x48f   :  { %v507_v29 = vsel %vm503_vm14, %v502_v6, %v496_v19  ;;  %v681_v0 = vpack.c.bf16 %v672_v17, %v668_v36  ;;  %v680_v7 = vpack.c.bf16 %v671_v60, %v667_v11  ;;  %v616_v41 = vrot.slane %v494_v40, 4 }
 0x490   :  { %v512_v5 = vmul.f32 %v508_v38, %v507_v29 }
 0x491   :  { %756 = vmatprep.subr.bf16.mxu1 %v681_v0 }
 0x492   :  { %v661_v24 = vsel %vm360_vm4, %v512_v5, %v625_v10  ;;  %v521_v16 = vpop.permute.xlu1 %520  ;;  %757 = vmatpush1.bf16.msra.mxu1 %v680_v7 }
 0x493   :  { %v525_v19 = vsel %vm524_vm9, %v521_v16, %v1623_v53  ;;  %v526_v18 = vsel %vm524_vm9, %v1604_v23, %v521_v16  ;;  %v674_v25 = vpack.c.bf16 %v661_v24, %v657_v31  ;;  %v477_v53 = vmul.f32 %v473_v27, %v466_v3  ;;  %v822_v31 = vld [vmem:[%s1845_s9] sm:$0xff] }
 0x494   :  { %v531_v26 = vmul.f32 %v526_v18, %v1673_v22  ;;  %v532_v21 = vmul.f32 %v525_v19, %v432_v58 }
 0x495   :  { %718 = vmatpush1.bf16.msra.mxu0 %v674_v25  ;;  %v660_v14 = vsel %vm360_vm4, %v477_v53, %v616_v41  ;;  %v789_v25 = vld [vmem:[%s1843_s7] sm:$0xf]  ;;  %v823_v53 = vld [vmem:[%s1845_s9 + $0x8] sm:$0xff] }
 0x496   :  { %v500_v38 = vpop.permute.xlu1 %499  ;;  %v627_v22 = vrot.slane %v531_v26, 4  ;;  %v628_v43 = vrot.slane %v532_v21, 4 }
 0x497   :  { %v504_v23 = vsel %vm503_vm14, %v500_v38, %v502_v6  ;;  %v505_v42 = vsel %vm503_vm14, %v1627_v57, %v500_v38 }
 0x498   :  { %v514_v58 = vmul.f32 %v510_v30, %v505_v42  ;;  %v515_v48 = vmul.f32 %v511_v35, %v504_v23  ;;  %1156 = vmatmul.mubr.msk.bf16.vlgmr.msra.gmra.mxu0 %vm686_vm1, %v673_v55  ;;  %v790_v30 = vld [vmem:[%s1844_s8] sm:$0xf] }
 0x499   :  { %1197 = vmatprep.mubr.msk.f32.mxu0 %vm830_vm2, %v822_v31 }
 0x49a   :  { %v663_v50 = vsel %vm360_vm4, %v514_v58, %v627_v22  ;;  %v664_v44 = vsel %vm360_vm4, %v515_v48, %v628_v43 }
 0x49b   :  { %v677_v51 = vpack.c.bf16 %v664_v44, %v660_v14  ;;  %v676_v45 = vpack.c.bf16 %v663_v50, %v659_v49 }
 0x49d   :  { %758 = vmatprep.subr.bf16.mxu1 %v677_v51 }
 0x49e   :  { %759 = vmatpush1.bf16.msra.mxu1 %v676_v45 }
 0x4a1   :  { %1158 = vmatmul.mubr.msk.bf16.vlgmr.msra.gmra.mxu1 %vm686_vm1, %v673_v55 }
 0x4a2   :  { %1202 = vmatprep.mubr.msk.f32.mxu1 %vm830_vm2, %v822_v31  ;;  %v1234_v31 = vld [vmem:[%s1836_s0 + $0x30] sm:$0xff] }
 0x558   :  { %v737_v57 = vpop.f32.mrf.mxu0 }
 0x559   :  { %v1756_v54 = vmax.f32 %v737_v57, 0.0 }
 0x55a   :  { %v739_v13 = vpop.f32.mrf.mxu0 }
 0x55b   :  { %v1758_v4 = vmax.f32 %v739_v13, 0.0  ;;  %v800_v56 = vmul.f32 %v1756_v54, %v1756_v54  ;;  %v791_v8 = vsel %vm360_vm4, %v1756_v54, 0.0  ;;  %v994_v41 = vpack.c.bf16 %v1756_v54, %v1756_v54 }
 0x55c   :  { %v741_v52 = vpop.f32.mrf.mxu0 }
 0x55d   :  { %v801_v62 = vmul.f32 %v1758_v4, %v1758_v4  ;;  %v792_v9 = vsel %vm360_vm4, %v1758_v4, 0.0  ;;  %v804_v47 = vsel %vm360_vm4, %v800_v56, 0.0  ;;  %v995_v22 = vpack.c.bf16 %v1758_v4, %v1758_v4 }
 0x55e   :  { %v742_v63 = vpop.f32.mrf.mxu0  ;;  %v793_v20 = vadd.f32 %v792_v9, %v791_v8  ;;  %v1012_v43 = vsel %vm690_vm10, %v994_v41, 0  ;;  %v1229_v8 = vld [vmem:[%s1836_s0] sm:$0xff] }
 0x55f   :  { %v805_v36 = vsel %vm360_vm4, %v801_v62, 0.0 }
 0x560   :  { %v806_v29 = vadd.f32 %v805_v36, %v804_v47 }
 0x561   :  { %v778_v11 = vpop.f32.mrf.mxu1 }
 0x562   :  { %v787_v12 = vmax.f32 %v778_v11, 0.0  ;;  %v1230_v11 = vld [vmem:[%s1836_s0 + $0x10] sm:$0xff] }
 0x563   :  { %v780_v2 = vpop.f32.mrf.mxu1 }
 0x564   :  { %v802_v60 = vmul.f32 %v787_v12, %v787_v12  ;;  %v788_v6 = vmax.f32 %v780_v2, 0.0  ;;  %v794_v17 = vsel %vm360_vm4, %v787_v12, 0.0  ;;  %v996_v55 = vpack.c.bf16 %v787_v12, %v787_v12 }
 0x565   :  { %v782_v33 = vpop.f32.mrf.mxu1  ;;  %v795_v34 = vadd.f32 %v794_v17, %v793_v20  ;;  %v1231_v17 = vld [vmem:[%s1836_s0 + $0x8] sm:$0xff] }
 0x566   :  { %v796_v0 = vsel %vm360_vm4, %v788_v6, 0.0  ;;  %v803_v7 = vmul.f32 %v788_v6, %v788_v6  ;;  %v807_v10 = vsel %vm360_vm4, %v802_v60, 0.0  ;;  %v997_v38 = vpack.c.bf16 %v788_v6, %v788_v6 }
 0x567   :  { %v783_v46 = vpop.f32.mrf.mxu1  ;;  %v797_v5 = vadd.f32 %v796_v0, %v795_v34  ;;  %v808_v15 = vadd.f32 %v807_v10, %v806_v29  ;;  %v1018_v39 = vsel %vm690_vm10, %v996_v55, 0  ;;  %v1232_v34 = vld [vmem:[%s1836_s0 + $0x18] sm:$0xff] }
 0x568   :  { %v809_v1 = vsel %vm360_vm4, %v803_v7, 0.0 }
 0x569   :  { %798 = vadd.xlane.f32.xlu0 %v797_v5  ;;  %v810_v27 = vadd.f32 %v809_v1, %v808_v15  ;;  %v1233_v1 = vld [vmem:[%s1836_s0 + $0x20] sm:$0xff] }
 0x56b   :  { %811 = vadd.xlane.f32.xlu1 %v810_v27 }
 0x5f2   :  { %v799_v40 = vpop.xlane.xlu0 %798 }
 0x5f3   :  { %v813_v3 = vmul.f32 0.001953125, %v799_v40 }
 0x5f4   :  { %v812_v24 = vpop.xlane.xlu1 %811 }
 0x5f5   :  { %v815_v16 = vmul.f32 %v813_v3, %v813_v3  ;;  %v814_v32 = vmul.f32 0.001953125, %v812_v24 }
 0x5f7   :  { %v816_v19 = vsub.f32 %v814_v32, %v815_v16  ;;  %v1236_v16 = vld [vmem:[%s1836_s0 + $0x38] sm:$0xff] }
 0x5f9   :  { %v817_v18 = vadd.f32 1e-05, %v816_v19 }
 0x5fb   :  { %1227 = vrsqrt.f32 %v817_v18 }
 0x608   :  { %v1228_v26 = vpop.eup %1227 }
 0x609   :  { %v819_v21 = vmul.f32 %v1228_v26, %v789_v25 }
 0x60b   :  { %826 = vperm.xlu0 %1219, %v819_v21   ;;  %v820_v35 = vmul.f32 %v819_v21, %v813_v3  ;;  %v1235_v3 = vld [vmem:[%s1836_s0 + $0x28] sm:$0xff] }
 0x60d   :  { %v821_v37 = vsub.f32 %v790_v30, %v820_v35 }
 0x60f   :  { %1200 = vmatprep.subr.msk.mxu1 %vm360_vm4, %v821_v37 }
 0x610   :  { %1201 = vmatpush3.msk.msra.mxu1 %vm360_vm4, %v821_v37 }
 0x611   :  { %1203 = vmatmul.mubr.msk.f32.vlgmr.msra.gmra.mxu1 %vm830_vm2, %v823_v53  ;;  %1167 = vmatprep.subr.msk.bf16.mxu1 %vm690_vm10, %v997_v38 }
 0x612   :  { %1081 = vmatpush1.bf16.msra.mxu1 %v1018_v39  ;;  %1098 = vmatprep.mubr.bf16.mxu1 %v1259_v28 }
 0x686   :  { %v827_v23 = vpop.permute.xlu0 %826 }
 0x687   :  { %v829_v42 = vsel %vm101_vm3, %v827_v23, 0.0 }
 0x688   :  { %1195 = vmatprep.subr.msk.mxu0 %vm360_vm4, %v829_v42 }
 0x689   :  { %1196 = vmatpush3.msk.msra.mxu0 %vm360_vm4, %v829_v42 }
 0x68a   :  { %1198 = vmatmul.mubr.msk.f32.vlgmr.msra.gmra.mxu0 %vm830_vm2, %v823_v53  ;;  %1165 = vmatprep.subr.msk.bf16.mxu0 %vm690_vm10, %v995_v22 }
 0x68b   :  { %1038 = vmatpush1.bf16.msra.mxu0 %v1012_v43  ;;  %1055 = vmatprep.mubr.bf16.mxu0 %v1259_v28 }
 0x6d1   :  { %v1204_v58 = vpop.f32.mrf.mxu1 }
 0x6d2   :  { %1005 = vperm.xlu0 %1219, %v1204_v58  }
 0x6d3   :  { %v984_v59 = vpop.f32.mrf.mxu1 }
 0x6d4   :  { %1000 = vperm.xlu1 %1220, %v984_v59  }
 0x74a   :  { %v1199_v61 = vpop.f32.mrf.mxu0 }
 0x74c   :  { %v906_v48 = vpop.f32.mrf.mxu0 }
 0x74d   :  { %v993_v49 = vpack.c.bf16 %v1199_v61, %v906_v48  ;;  %v1006_v63 = vpop.permute.xlu0 %1005 }
 0x74f   :  { %1166 = vmatmul.mubr.msk.bf16.vlgmr.msra.gmra.mxu0 %vm830_vm2, %v993_v49  ;;  %1168 = vmatmul.mubr.msk.bf16.vlgmr.msra.gmra.mxu1 %vm830_vm2, %v993_v49  ;;  %v1001_v50 = vpop.permute.xlu1 %1000 }
 0x80f   :  { %v1057_v14 = vpop.f32.mrf.mxu0  ;;  %v1100_v44 = vpop.f32.mrf.mxu1 }
 0x810   :  { %v1058_v51 = vadd.f32 %v1057_v14, %v1001_v50  ;;  %v1101_v45 = vadd.f32 %v1100_v44, %v1001_v50 }
 0x811   :  { %v1059_v57 = vpop.f32.mrf.mxu0  ;;  %v1102_v54 = vpop.f32.mrf.mxu1 }
 0x812   :  { %v1109_v13 = vmax.f32 %v1058_v51, 0.0  ;;  %v1111_v28 = vmax.f32 %v1101_v45, 0.0  ;;  %v1060_v4 = vadd.f32 %v1059_v57, %v1001_v50  ;;  %v1103_v52 = vadd.f32 %v1102_v54, %v1001_v50 }
 0x813   :  { %v1061_v56 = vpop.f32.mrf.mxu0  ;;  %v1104_v62 = vpop.f32.mrf.mxu1 }
 0x814   :  { %v1117_v9 = vadd.f32 %v1229_v8, %v1109_v13  ;;  %v1119_v12 = vadd.f32 %v1230_v11, %v1111_v28  ;;  %v1110_v47 = vmax.f32 %v1060_v4, 0.0  ;;  %v1112_v36 = vmax.f32 %v1103_v52, 0.0 }
 0x815   :  { %v1062_v2 = vadd.f32 %v1061_v56, %v1006_v63  ;;  %v1105_v20 = vadd.f32 %v1104_v62, %v1006_v63  ;;  %v1063_v60 = vpop.f32.mrf.mxu0  ;;  %v1106_v6 = vpop.f32.mrf.mxu1 }
 0x816   :  { %1125 = vst [vmem:[#allocation2] sm:$0xff] %v1117_v9  ;;  %1127 = vst [vmem:[#allocation2 + $0x10] sm:$0xff] %v1119_v12  ;;  %v1118_v33 = vadd.f32 %v1231_v17, %v1110_v47  ;;  %v1120_v29 = vadd.f32 %v1232_v34, %v1112_v36  ;;  %v1064_v0 = vadd.f32 %v1063_v60, %v1006_v63 }
 0x817   :  { %v1107_v7 = vadd.f32 %v1106_v6, %v1006_v63  ;;  %v1113_v10 = vmax.f32 %v1062_v2, 0.0  ;;  %v1115_v46 = vmax.f32 %v1105_v20, 0.0 }
 0x818   :  { %1126 = vst [vmem:[#allocation2 + $0x8] sm:$0xff] %v1118_v33  ;;  %1128 = vst [vmem:[#allocation2 + $0x18] sm:$0xff] %v1120_v29  ;;  %v1114_v5 = vmax.f32 %v1064_v0, 0.0 }
 0x819   :  { %v1116_v15 = vmax.f32 %v1107_v7, 0.0  ;;  %v1121_v27 = vadd.f32 %v1233_v1, %v1113_v10  ;;  %v1123_v40 = vadd.f32 %v1234_v31, %v1115_v46 }
 0x81a   :  { %v1122_v24 = vadd.f32 %v1235_v3, %v1114_v5 }
 0x81b   :  { %v1124_v32 = vadd.f32 %v1236_v16, %v1116_v15  ;;  %1129 = vst [vmem:[#allocation2 + $0x20] sm:$0xff] %v1121_v27  ;;  %1131 = vst [vmem:[#allocation2 + $0x30] sm:$0xff] %v1123_v40 }
 0x81c   :  { %1130 = vst [vmem:[#allocation2 + $0x28] sm:$0xff] %v1122_v24 }
 0x81d   :  { %1132 = vst [vmem:[#allocation2 + $0x38] sm:$0xff] %v1124_v32 }
 0x81e   :  { %1248 = shalt.err (!%p1245_p4)
}
 0x81f   :  { %s1271_s26 = smov 512   ;;  %s1272_s27 = smov 32  }
 0x820   :  { %1144 = dma.vmem_to_hbm [thread:$0]  %s1139_s3, 1024, %s1846_s10, [#allocation3], %s1271_s26, %s1271_s26, %s1272_s27  }
 0x821   :  { %1257 = dma.done.wait [#allocation3], 1024  }
 0x822   :  { %1258 = vsyncadd [#allocation3], 4294966272 }
 0x823   :  { %1148 = vsyncpa [#allocation3], 1 }

</bundles_post_ra>
